<compile_context>
chip_gen: v6e
topology: v6e:2x2x1
jax: 0.10.0
libtpu: 0.0.40
codegen_flags: <defaults>
</compile_context>

<pallas_src>
import jax
import jax.numpy as jnp
from jax.experimental import pallas as pl
from jax.experimental.pallas import tpu as pltpu


# ---------------------------------------------------------------------------
# Default forward: zero-copy aliased pass-through (no HBM traffic).
# ---------------------------------------------------------------------------
def _alias_passthrough_kernel(x_hbm_ref, o_hbm_ref, flag_smem):
    # The output HBM buffer is aliased to the input buffer, so the identity
    # requires no data movement at all. The refs are intentionally untouched;
    # a single SMEM store keeps the kernel body non-empty.
    del x_hbm_ref, o_hbm_ref
    flag_smem[0] = jnp.int32(1)


def base_model_forward(x: jax.Array) -> jax.Array:
    """Pallas 'forward' for BaseModel: identity over the input tensor.

    The output aliases the input HBM buffer (input_output_aliases), so the
    kernel itself reads/writes zero bytes of HBM. XLA only inserts a
    defensive copy when the caller still needs the original buffer (as in
    the eager demo below); inside a larger jitted model the copy vanishes.
    """
    return pl.pallas_call(
        _alias_passthrough_kernel,
        out_shape=jax.ShapeDtypeStruct(x.shape, x.dtype),
        in_specs=[pl.BlockSpec(memory_space=pl.ANY)],
        out_specs=pl.BlockSpec(memory_space=pl.ANY),
        scratch_shapes=[pltpu.SMEM((1,), jnp.int32)],
        input_output_aliases={0: 0},
    )(x)


# ---------------------------------------------------------------------------
# Materializing variant: lane-dense flattened streaming copy.
# ---------------------------------------------------------------------------
def _copy_kernel(x_ref, o_ref):
    o_ref[...] = x_ref[...]


_MAX_BLOCK_BYTES = 8 * 1024 * 1024  # 4x resident (double-buffered in + out)
                                    # stays well inside v7x's 64 MiB VMEM.


def base_model_copy_forward(x: jax.Array) -> jax.Array:
    """Identity that actually materializes a copy, tiled for HBM roofline."""
    total = int(x.size)
    itemsize = x.dtype.itemsize

    # Widest lane-dense last dimension: multiple of 128 lanes, up to 1024.
    lanes = 128
    if total % lanes != 0:
        # Not lane-divisible: fall back to the zero-copy aliased identity.
        return base_model_forward(x)
    while lanes < 1024 and total % (lanes * 2) == 0:
        lanes *= 2
    rows = total // lanes
    x2d = x.reshape(rows, lanes)

    # Rows per block: a multiple of 8 sublanes (or the full row extent),
    # grown up to _MAX_BLOCK_BYTES to amortize the ~0.35 us per-step cost.
    if rows % 8 == 0:
        block_rows = 8
        while (block_rows * 2 <= rows
               and rows % (block_rows * 2) == 0
               and block_rows * 2 * lanes * itemsize <= _MAX_BLOCK_BYTES):
            block_rows *= 2
    else:
        if rows * lanes * itemsize > _MAX_BLOCK_BYTES:
            return base_model_forward(x)
        block_rows = rows  # full extent: exempt from the (8, 128) constraint

    grid = (rows // block_rows,)

    y2d = pl.pallas_call(
        _copy_kernel,
        out_shape=jax.ShapeDtypeStruct((rows, lanes), x.dtype),
        grid=grid,
        in_specs=[pl.BlockSpec((block_rows, lanes), lambda i: (i, 0))],
        out_specs=pl.BlockSpec((block_rows, lanes), lambda i: (i, 0)),
        compiler_params=pltpu.CompilerParams(
            # One grid axis over the flattened stream; 'parallel' lets v7x's
            # two TensorCores each stream half of the tensor.
            dimension_semantics=("parallel",),
            vmem_limit_bytes=48 * 1024 * 1024,
        ),
        cost_estimate=pl.CostEstimate(
            flops=0,
            transcendentals=0,
            bytes_accessed=2 * total * itemsize,
        ),
    )(x2d)
    return y2d.reshape(x.shape)


def base_model_num_trainable_params() -> int:
    """Mirror of BaseModel.summary()/__str__(): trainable-parameter count."""
    # BaseModel registers no nn.Parameter / submodules -> 0 parameters.
    params = {}  # deterministic, empty parameter pytree
    return sum(int(jnp.size(p)) for p in jax.tree_util.tree_leaves(params))


if __name__ == "__main__":
    key = jax.random.PRNGKey(0)
    # Small NCHW input consistent with an image-model base class.
    x = jax.random.normal(key, (2, 4, 16, 16), dtype=jnp.float32)

    y = base_model_forward(x)        # aliased, zero-HBM-traffic identity
    z = base_model_copy_forward(x)   # lane-dense materializing identity
    jax.block_until_ready((y, z))

    # Sanity checks: identity semantics + zero trainable parameters.
    assert y.shape == x.shape and y.dtype == x.dtype
    assert z.shape == x.shape and z.dtype == x.dtype
    assert bool(jnp.allclose(y, x))
    assert bool(jnp.allclose(z, x))
    assert base_model_num_trainable_params() == 0

    print("KERNEL_OK")
</pallas_src>

<mosaic_0001>
module attributes {stable_mosaic.version = 11 : i64} {
  func.func @_alias_passthrough_kernel(%arg0: memref<2x4x16x16xf32, #tpu.memory_space<any>>, %arg1: memref<2x4x16x16xf32, #tpu.memory_space<any>>, %arg2: memref<1xi32, #tpu.memory_space<smem>>) attributes {dimension_semantics = [], scalar_prefetch = 0 : i64, scratch_operands = 1 : i64, tpu.core_type = #tpu.core_type<tc>} {
    %c1_i32 = arith.constant 1 : i32
    %c0 = arith.constant 0 : index
    %0 = memref.load %arg2[%c0] : memref<1xi32, #tpu.memory_space<smem>>
    memref.store %c1_i32, %arg2[%c0] : memref<1xi32, #tpu.memory_space<smem>>
    return
  }
}

</mosaic_0001>

<bundles_post_ra>
// kernel: tpu_custom_call.1
= control target key start
LH: loop header
LB: loop body
LE: loop exit
PB: predicated region body
PF: predicated region fallthrough
CT: control target
= control target key end

     0   :  { %s18_s0 = inlined_call_operand.hbm [shape: f32[2,4,16,16], index: 0, kind: input, shape index: {}, may-alias: {0,1}]   ;;  %s19_s1 = inlined_call_operand.hbm [shape: f32[2,4,16,16], index: 1, kind: output, shape index: {}, may-alias: {0,1}]  }

</bundles_post_ra>
